<compile_context>
chip_gen: v6e
topology: v6e:2x2x1
jax: 0.10.0
libtpu: 0.0.40
codegen_flags: <defaults>
</compile_context>

<pallas_src>
import math

import jax
import jax.numpy as jnp
from jax.experimental import pallas as pl
from jax.experimental.pallas import tpu as pltpu

_LANE = 128
_SUBLANE = 8
_W_BUDGET_BYTES = 8 << 20          # max VMEM allowed for the resident W block(s)
_DEFAULT_TILE_BUDGET = 24 << 20    # target footprint: x/out tiles + W + phase


def _round_up(a, b):
    return ((a + b - 1) // b) * b


def periodic_kernel(x_ref, w_ref, phase_ref, o_ref):
    # x_ref:     (TB, TF)      batch tile of the (padded) input
    # w_ref:     (1, TF, MB)   block-diagonal 2*pi*coefficients for TF features
    # phase_ref: (1, MB)       0 on cos lanes, -pi/2 on sin lanes
    # o_ref:     (TB, MB)      lane-dense output slab
    v = jnp.dot(x_ref[...], w_ref[0], preferred_element_type=jnp.float32)
    o_ref[...] = jnp.cos(v + phase_ref[...]).astype(o_ref.dtype)


def _choose_feature_tile(f, two_n):
    # Single feature block if the whole block-diagonal W fits the W budget,
    # otherwise a 128-multiple tile (keeps x blocks lane-aligned).
    if f * _round_up(f * two_n, _LANE) * 4 <= _W_BUDGET_BYTES:
        return f
    for tf in (512, 256, 128):
        if 2 * tf * _round_up(tf * two_n, _LANE) * 4 <= _W_BUDGET_BYTES:
            return tf
    return 128


def _choose_batch_tile(b, tf, mb, w_resident_bytes, out_itemsize, budget):
    # Double-buffered x + out rows; W/phase residency subtracted from budget.
    per_row = 2 * tf * 4 + 2 * mb * out_itemsize
    avail = max(budget - w_resident_bytes - mb * 4, per_row * _SUBLANE)
    cap = max(_SUBLANE, (avail // per_row) // _SUBLANE * _SUBLANE)
    bt = min(_round_up(b, _SUBLANE), cap)
    if b >= 2 * _SUBLANE:
        # Keep >= 2 batch steps so v7x megacore can shard the "parallel" axis;
        # one extra grid step costs ~0.35us on single-TC chips (negligible).
        bt = min(bt, _round_up(_round_up(b, _SUBLANE) // 2, _SUBLANE))
    return max(_SUBLANE, (bt // _SUBLANE) * _SUBLANE)


def periodic_forward(x, coefficients, *, out_dtype=None, batch_tile=None,
                     feature_tile=None, vmem_budget_bytes=_DEFAULT_TILE_BUDGET):
    """x: (B, F), coefficients: (F, N) -> (B, F, 2N) = cat([cos(v), sin(v)], -1)."""
    assert x.ndim == 2
    B, F = x.shape
    Fc, N = coefficients.shape
    assert F == Fc
    out_dtype = x.dtype if out_dtype is None else jnp.dtype(out_dtype)
    out_itemsize = jnp.dtype(out_dtype).itemsize
    two_n = 2 * N

    # ----- feature-block tiling of the block-diagonal W ----------------------
    tf = _choose_feature_tile(F, two_n) if feature_tile is None else feature_tile
    if tf >= F:
        tf, f_pad = F, F
    else:
        assert tf % _LANE == 0, "feature_tile must be a multiple of 128 (or >= F)"
        f_pad = _round_up(F, tf)
    n_fb = f_pad // tf
    mb = _round_up(tf * two_n, _LANE)      # lane-padded per-block output width
    w_buffers = 1 if n_fb == 1 else 2      # constant index map -> single buffer

    # ----- one-time parameter repacking (would live in module init) ----------
    coef = jnp.asarray(coefficients, jnp.float32)
    coef = jnp.pad(coef, ((0, f_pad - F), (0, 0)))
    coef2 = (2.0 * math.pi) * jnp.concatenate([coef, coef], axis=-1)  # (f_pad, 2N)
    coef2 = coef2.reshape(n_fb, tf, two_n)
    eye = jnp.eye(tf, dtype=jnp.float32)
    w = (eye[None, :, :, None] * coef2[:, None, :, :]).reshape(n_fb, tf, tf * two_n)
    w = jnp.pad(w, ((0, 0), (0, 0), (0, mb - tf * two_n)))            # (n_fb, tf, mb)
    lane = jnp.arange(tf * two_n) % two_n
    phase = jnp.where(lane < N, 0.0, -0.5 * math.pi).astype(jnp.float32)
    phase = jnp.pad(phase, (0, mb - tf * two_n)).reshape(1, mb)       # (1, mb)

    # ----- batch tiling / padding --------------------------------------------
    w_resident = w_buffers * tf * mb * 4
    if batch_tile is None:
        batch_tile = _choose_batch_tile(B, tf, mb, w_resident, out_itemsize,
                                        vmem_budget_bytes)
    assert batch_tile % _SUBLANE == 0
    b_pad = _round_up(B, batch_tile)
    x_pad = jnp.pad(jnp.asarray(x, jnp.float32), ((0, b_pad - B), (0, f_pad - F)))

    grid = (b_pad // batch_tile, n_fb)
    footprint = (2 * batch_tile * tf * 4 + 2 * batch_tile * mb * out_itemsize
                 + w_resident + mb * 4)
    vmem_limit = int(min(max(footprint + (4 << 20), 16 << 20), 64 << 20))

    cost = pl.CostEstimate(
        flops=2 * b_pad * tf * mb * n_fb + b_pad * mb * n_fb,
        transcendentals=b_pad * mb * n_fb,
        bytes_accessed=4 * (b_pad * f_pad + n_fb * tf * mb + mb)
        + out_itemsize * b_pad * mb * n_fb,
    )

    def call(single_buffer_consts):
        w_kw = ({"pipeline_mode": pl.Buffered(1)}
                if (single_buffer_consts and w_buffers == 1) else {})
        p_kw = ({"pipeline_mode": pl.Buffered(1)} if single_buffer_consts else {})
        return pl.pallas_call(
            periodic_kernel,
            out_shape=jax.ShapeDtypeStruct((b_pad, n_fb * mb), out_dtype),
            grid_spec=pltpu.PrefetchScalarGridSpec(
                num_scalar_prefetch=0,
                grid=grid,
                in_specs=[
                    pl.BlockSpec((batch_tile, tf), lambda i, j: (i, j)),
                    pl.BlockSpec((1, tf, mb), lambda i, j: (j, 0, 0), **w_kw),
                    pl.BlockSpec((1, mb), lambda i, j: (0, 0), **p_kw),
                ],
                out_specs=pl.BlockSpec((batch_tile, mb), lambda i, j: (i, j)),
            ),
            compiler_params=pltpu.CompilerParams(
                dimension_semantics=("parallel", "parallel"),
                vmem_limit_bytes=vmem_limit),
            cost_estimate=cost,
        )(x_pad, w, phase)

    try:
        out_flat = call(True)
    except Exception:
        # TODO(synk): BlockSpec(pipeline_mode=...) unsupported on this jax
        # version; fall back to default double-buffering (extra W residency only).
        out_flat = call(False)

    # Strip lane / feature / batch padding; all free when no padding was added.
    out = out_flat.reshape(b_pad, n_fb, mb)[:B, :, :tf * two_n]
    return out.reshape(B, f_pad, two_n)[:, :F, :]


def make_log_linear_coefficients(n_features, n, sigma):
    # Matches PyTorch 'log-linear' init: sigma ** (arange(n)/n) per feature.
    row = sigma ** (jnp.arange(n, dtype=jnp.float32) / n)
    return jnp.tile(row[None, :], (n_features, 1))


def _reference(x, coefficients):
    v = 2.0 * jnp.pi * coefficients[None, :, :] * x[:, :, None]
    return jnp.concatenate([jnp.cos(v), jnp.sin(v)], axis=-1)


if __name__ == "__main__":
    key = jax.random.PRNGKey(0)
    k1, k2 = jax.random.split(key)

    # 1) Module-scale config ('log-linear' init), f32 output.
    B, F, N, SIGMA = 16, 4, 8, 0.1
    x = jax.random.normal(k1, (B, F), dtype=jnp.float32)
    coef = make_log_linear_coefficients(F, N, SIGMA)
    out = jax.block_until_ready(periodic_forward(x, coef))
    ref = _reference(x, coef)
    assert out.shape == (B, F, 2 * N)
    assert jnp.allclose(out, ref, atol=1e-3, rtol=1e-3), float(
        jnp.max(jnp.abs(out - ref)))

    # 2) bf16-output path (halves HBM writeback; compute stays f32).
    out_bf16 = jax.block_until_ready(
        periodic_forward(x, coef, out_dtype=jnp.bfloat16))
    assert jnp.allclose(out_bf16.astype(jnp.float32), ref, atol=2e-2, rtol=2e-2)

    # 3) Feature-tiled path (large-F / v7x shape): exercises blocked W,
    #    batch padding and feature padding ('normal'-style coefficients).
    B2, F2, N2 = 12, 130, 4
    x2 = jax.random.normal(k2, (B2, F2), dtype=jnp.float32)
    coef2 = 0.05 * jax.random.normal(jax.random.PRNGKey(1), (F2, N2), jnp.float32)
    out2 = jax.block_until_ready(periodic_forward(x2, coef2, feature_tile=128))
    ref2 = _reference(x2, coef2)
    assert out2.shape == (B2, F2, 2 * N2)
    assert jnp.allclose(out2, ref2, atol=1e-3, rtol=1e-3), float(
        jnp.max(jnp.abs(out2 - ref2)))

    print("KERNEL_OK")
</pallas_src>

<mosaic_0001>
module attributes {stable_mosaic.version = 11 : i64} {
  func.func @periodic_kernel(%arg0: i32, %arg1: i32, %arg2: memref<8x4xf32, #tpu.memory_space<vmem>>, %arg3: memref<1x4x128xf32, #tpu.memory_space<vmem>>, %arg4: memref<1x128xf32, #tpu.memory_space<vmem>>, %arg5: memref<8x128xf32, #tpu.memory_space<vmem>>) attributes {dimension_semantics = [#tpu.dimension_semantics<parallel>, #tpu.dimension_semantics<parallel>], iteration_bounds = array<i64: 2, 1>, scalar_prefetch = 0 : i64, scratch_operands = 0 : i64, tpu.core_type = #tpu.core_type<tc>, window_params = [{transform_indices = @transform_0, window_bounds = array<i64: 8, 4>}, {pipeline_mode = #tpu.pipeline_mode<synchronous>, transform_indices = @transform_1, window_bounds = array<i64: 1, 4, 128>}, {pipeline_mode = #tpu.pipeline_mode<synchronous>, transform_indices = @transform_2, window_bounds = array<i64: 1, 128>}, {transform_indices = @transform_3, window_bounds = array<i64: 8, 128>}]} {
    %c0 = arith.constant 0 : index
    %c0_0 = arith.constant 0 : index
    %0 = vector.load %arg2[%c0, %c0_0] : memref<8x4xf32, #tpu.memory_space<vmem>>, vector<8x4xf32>
    %c0_1 = arith.constant 0 : index
    %c0_2 = arith.constant 0 : index
    %c0_3 = arith.constant 0 : index
    %1 = vector.load %arg3[%c0_1, %c0_2, %c0_3] : memref<1x4x128xf32, #tpu.memory_space<vmem>>, vector<1x4x128xf32>
    %2 = vector.shape_cast %1 : vector<1x4x128xf32> to vector<4x128xf32>
    %cst = arith.constant dense<0.000000e+00> : vector<8x128xf32>
    %3 = tpu.matmul %0, %2, %cst {dimension_numbers = #tpu.dot_dimension_numbers<[1], [0], [0], [1], [0, 0, 1, 1], [], []>} : vector<8x4xf32>, vector<4x128xf32>, vector<8x128xf32> -> vector<8x128xf32>
    %c0_4 = arith.constant 0 : index
    %c0_5 = arith.constant 0 : index
    %4 = vector.load %arg4[%c0_4, %c0_5] : memref<1x128xf32, #tpu.memory_space<vmem>>, vector<1x128xf32>
    %5 = vector.broadcast %4 : vector<1x128xf32> to vector<8x128xf32>
    %6 = arith.addf %3, %5 : vector<8x128xf32>
    %7 = math.cos %6 : vector<8x128xf32>
    %c0_6 = arith.constant 0 : index
    %c0_7 = arith.constant 0 : index
    %8 = vector.load %arg5[%c0_6, %c0_7] : memref<8x128xf32, #tpu.memory_space<vmem>>, vector<8x128xf32>
    tpu.vector_store %arg5[%c0_6, %c0_7], %7 {strides = array<i32>} : memref<8x128xf32, #tpu.memory_space<vmem>>, vector<8x128xf32>,
    return
  }
  func.func @transform_0(%arg0: i32, %arg1: i32) -> (i32, i32) {
    %c0_i32 = arith.constant 0 : i32
    return %arg0, %arg1 : i32, i32
  }
  func.func @transform_1(%arg0: i32, %arg1: i32) -> (i32, i32, i32) {
    %c0_i32 = arith.constant 0 : i32
    %c0_i32_0 = arith.constant 0 : i32
    %c0_i32_1 = arith.constant 0 : i32
    return %arg1, %c0_i32, %c0_i32_0 : i32, i32, i32
  }
  func.func @transform_2(%arg0: i32, %arg1: i32) -> (i32, i32) {
    %c0_i32 = arith.constant 0 : i32
    %c0_i32_0 = arith.constant 0 : i32
    %c0_i32_1 = arith.constant 0 : i32
    return %c0_i32, %c0_i32_0 : i32, i32
  }
  func.func @transform_3(%arg0: i32, %arg1: i32) -> (i32, i32) {
    %c0_i32 = arith.constant 0 : i32
    return %arg0, %arg1 : i32, i32
  }
}

module attributes {stable_mosaic.version = 11 : i64} {
  func.func @periodic_kernel(%arg0: i32, %arg1: i32, %arg2: memref<8x4xf32, #tpu.memory_space<vmem>>, %arg3: memref<1x4x128xf32, #tpu.memory_space<vmem>>, %arg4: memref<1x128xf32, #tpu.memory_space<vmem>>, %arg5: memref<8x128xf32, #tpu.memory_space<vmem>>) attributes {dimension_semantics = [#tpu.dimension_semantics<parallel>, #tpu.dimension_semantics<parallel>], iteration_bounds = array<i64: 2, 1>, scalar_prefetch = 0 : i64, scratch_operands = 0 : i64, tpu.core_type = #tpu.core_type<tc>, window_params = [{transform_indices = @transform_0, window_bounds = array<i64: 8, 4>}, {transform_indices = @transform_1, window_bounds = array<i64: 1, 4, 128>}, {pipeline_mode = #tpu.pipeline_mode<synchronous>, transform_indices = @transform_2, window_bounds = array<i64: 1, 128>}, {transform_indices = @transform_3, window_bounds = array<i64: 8, 128>}]} {
    %c0 = arith.constant 0 : index
    %c0_0 = arith.constant 0 : index
    %0 = vector.load %arg2[%c0, %c0_0] : memref<8x4xf32, #tpu.memory_space<vmem>>, vector<8x4xf32>
    %c0_1 = arith.constant 0 : index
    %c0_2 = arith.constant 0 : index
    %c0_3 = arith.constant 0 : index
    %1 = vector.load %arg3[%c0_1, %c0_2, %c0_3] : memref<1x4x128xf32, #tpu.memory_space<vmem>>, vector<1x4x128xf32>
    %2 = vector.shape_cast %1 : vector<1x4x128xf32> to vector<4x128xf32>
    %cst = arith.constant dense<0.000000e+00> : vector<8x128xf32>
    %3 = tpu.matmul %0, %2, %cst {dimension_numbers = #tpu.dot_dimension_numbers<[1], [0], [0], [1], [0, 0, 1, 1], [], []>} : vector<8x4xf32>, vector<4x128xf32>, vector<8x128xf32> -> vector<8x128xf32>
    %c0_4 = arith.constant 0 : index
    %c0_5 = arith.constant 0 : index
    %4 = vector.load %arg4[%c0_4, %c0_5] : memref<1x128xf32, #tpu.memory_space<vmem>>, vector<1x128xf32>
    %5 = vector.broadcast %4 : vector<1x128xf32> to vector<8x128xf32>
    %6 = arith.addf %3, %5 : vector<8x128xf32>
    %7 = math.cos %6 : vector<8x128xf32>
    %c0_6 = arith.constant 0 : index
    %c0_7 = arith.constant 0 : index
    %8 = vector.load %arg5[%c0_6, %c0_7] : memref<8x128xf32, #tpu.memory_space<vmem>>, vector<8x128xf32>
    tpu.vector_store %arg5[%c0_6, %c0_7], %7 {strides = array<i32>} : memref<8x128xf32, #tpu.memory_space<vmem>>, vector<8x128xf32>,
    return
  }
  func.func @transform_0(%arg0: i32, %arg1: i32) -> (i32, i32) {
    %c0_i32 = arith.constant 0 : i32
    return %arg0, %arg1 : i32, i32
  }
  func.func @transform_1(%arg0: i32, %arg1: i32) -> (i32, i32, i32) {
    %c0_i32 = arith.constant 0 : i32
    %c0_i32_0 = arith.constant 0 : i32
    %c0_i32_1 = arith.constant 0 : i32
    return %arg1, %c0_i32, %c0_i32_0 : i32, i32, i32
  }
  func.func @transform_2(%arg0: i32, %arg1: i32) -> (i32, i32) {
    %c0_i32 = arith.constant 0 : i32
    %c0_i32_0 = arith.constant 0 : i32
    %c0_i32_1 = arith.constant 0 : i32
    return %c0_i32, %c0_i32_0 : i32, i32
  }
  func.func @transform_3(%arg0: i32, %arg1: i32) -> (i32, i32) {
    %c0_i32 = arith.constant 0 : i32
    return %arg0, %arg1 : i32, i32
  }
}

</mosaic_0001>

<bundles_post_ra>
// kernel: tpu_custom_call.1
= control target key start
LH: loop header
LB: loop body
LE: loop exit
PB: predicated region body
PF: predicated region fallthrough
CT: control target
= control target key end

     0   :  { %8 = vsyncpa [#allocation3], 0  ;;  %s836_s0 = inlined_call_operand.vmem [shape: f32[16,4], index: 0, kind: input, shape index: {}]   ;;  %s837_s1 = inlined_call_operand.vmem [shape: f32[1,4,128], index: 1, kind: input, shape index: {}]   ;;  %s838_s2 = inlined_call_operand.vmem [shape: f32[1,128], index: 2, kind: input, shape index: {}]   ;;  %s839_s3 = inlined_call_operand.hbm [shape: f32[16,128], index: 3, kind: output, shape index: {}]  }
   0x1   :  { %10 = vsyncpa [#allocation3 + $0x1], 0  ;;  %s704_s12 = smov 0   ;;  %s706_s13 = smov 0  }
   0x2   :  { %s708_s14 = smov 0   ;;  %s710_s15 = smov 0  }
   0x3   :  { %s712_s16 = smov 0   ;;  %s714_s17 = smov 0  }
   0x4 LB: > { %s500_s18 = sadd.s32 4294967295, %s673_s17   ;;  %s501_s19 = sadd.s32 4294967294, %s673_s17   ;;  %s673_s17 = sphi %s714_s17, %s16_s17   ;;  %s669_s16 = sphi %s712_s16, %s846_s16   ;;  %s665_s15 = sphi %s710_s15, %s845_s15   ;;  %s661_s14 = sphi %s708_s14, %s844_s14   ;;  %s657_s13 = sphi %s706_s13, %s843_s13   ;;  %s653_s12 = sphi %s704_s12, %s842_s12  }
   0x5   : > { %s28_s20 = sadd.s32 1, %s669_s16  ;;  %s112_s21 = sadd.s32 1, %s661_s14 }
   0x6   : > { %p30_p0 = scmp.ge.s32.totalorder %s28_s20, 2  ;;  %p122_p1 = scmp.ne.s32.totalorder %s661_s14, %s657_s13 }
   0x7   : > { %p123_p2 = scmp.eq.s32.totalorder %s500_s18, 1  ;;  %p128_p3 = scmp.ne.s32.totalorder %s657_s13, %s653_s12 }
   0x8   : > { %s848_s20 = smov (%p30_p0, %s28_s20), 0  ;;  %p129_p5 = scmp.eq.s32.totalorder %s501_s19, 1 }
   0x9   : > { %p744_p4 = por %p123_p2, %p122_p1  ;;  %s107_s23 = ssub.s32 %s669_s16, %s848_s20 }
   0xa   : > { %p505_p6 = scmp.ge.s32.totalorder %s673_s17, 1  ;;  %p110_p7 = scmp.eq.s32.totalorder %s107_s23, 0 }
   0xb   : > { %p751_p8 = por %p129_p5, %p128_p3  ;;  %p167_p9 = scmp.lt.s32.totalorder %s673_s17, 3 }
   0xc   : > { %s757_s25 = scalar_select %p110_p7, %s661_s14, %s112_s21  }
   0xd   : > { %p168_p10 = pnand %p505_p6, %p167_p9 }
   0xe   : > { %p197_p11 = scmp.lt.s32.totalorder (!%p168_p10), %s665_s15, 1  ;;  %s194_s8 = sand.u32 (!%p168_p10), 1, %s657_s13  }
   0xf   : > { %171 = sbr.rel (%p168_p10) target bundleno = 315 (0x13b), region = 32  ;;  %s506_s9 = sshll.u32 (!%p168_p10), %s194_s8, 3 }
  0x10   : > { %s516_s10 = sshll.u32 (!%p168_p10), %s665_s15, 7  ;;  %s196_s11 = scalar_lea.vmem (!%p168_p10), [#allocation2], %s506_s9 }
  0x11   : > { %s414_s18 = sshll.u32 (!%p168_p10), %s196_s11, 4  ;;  %s796_s23 = scalar_lea.hbm (!%p168_p10), %s839_s3, %s516_s10  ;;  %s415_s18 = int_to_ptr.vmem [resolvable:$true] %s414_s18 }
  0x12   : > { %s400_s26 = scalar_lea.sflag (!%p168_p10), [#allocation3], %s194_s8  ;;  %s683_s27 = smov (!%p168_p10), [#allocation2]  }
  0x14   : > { %v209_v0 = vld [vmem:[%s837_s1] sm:$0xf]  ;;  %vm221_vm0 = vcmask 1043456   ;;  %v675_v1 = vmov 0.0   ;;  %vm676_vm1 = vmmov 0   ;;  %s198_s28 = scalar_select %p197_p11, %s665_s15, 1 }
  0x15   : > { %521 = vmatprep.subr.mxu0 %v675_v1  ;;  %523 = vmatprep.mubr.msk.f32.mxu0 %vm676_vm1, %v675_v1  ;;  %vm217_vm2 = vcmask 31744   ;;  %v508_v3 = vld [vmem:[%s838_s2] ss:$0 sm:$0xff]  ;;  %v677_v17 = vmov 683565275   ;;  %s597_s15 = scalar_lea.vmem %s415_s18, 128 }
  0x16   : > { %522 = vmatpush3.msk.msra.mxu0 %vm221_vm0, %v209_v0  ;;  %s507_s29 = sshll.u32 %s198_s28, 3  ;;  %v678_v19 = vmov 2475754826   ;;  %v679_v22 = vmov 2131351028   ;;  %p598_p12 = scmp.ne.s32.totalorder %s415_s18, %s597_s15 }
  0x17   : > { %s203_s5 = scalar_lea.vmem %s836_s0, %s507_s29  ;;  %v680_v25 = vmov 2102212464   ;;  %v681_v28 = vmov 920167782   ;;  %v682_v31 = vmov 1326507024  }
  0x18   : > { %v208_v2 = vld [vmem:[%s203_s5] sm:$0xff]  ;;  %p599_p13 = pnand %p598_p12, %p744_p4  ;;  %s601_s28 = sshll.u32 %s683_s27, 4  ;;  %s602_s28 = int_to_ptr.vmem [resolvable:$false] %s601_s28 }
  0x19   : > { %524 = vmatmul.mubr.msk.f32.vlgmr.msra.gmra.mxu0 %vm217_vm2, %v208_v2  ;;  %s603_s29 = scalar_lea.vmem %s602_s28, 256  ;;  %p604_p1 = scmp.lt.s32.totalorder %s415_s18, %s602_s28 }
  0x1a   : > { %p600_p0 = pneg %p599_p13  ;;  %p605_p2 = scmp.lt.s32.totalorder %s603_s29, %s597_s15 }
  0x1c   : > { %p606_p3 = por %p605_p2, %p604_p1 }
  0x1e   : > { %p607_p5 = pnand %p606_p3, %p600_p0 }
  0xd9   : > { %v291_v4 = vpop.f32.mrf.mxu0 }
  0xda   : > { %v770_v5 = vadd.f32 %v508_v3, %v291_v4 }
  0xdb   : > { %v525_v6 = vpop.f32.mrf.mxu0 }
  0xdc   : > { %v298_v7 = vand.u32 2139095040, %v770_v5  ;;  %v295_v11 = vand.u32 2147483647, %v770_v5  ;;  %vm297_vm10 = vcmp.lt.s32.totalorder %v770_v5, 0  ;;  %vm387_vm15 = vweird.f32 %v770_v5 }
  0xde   : > { %v299_v8 = vshrl.u32 %v298_v7, 23  ;;  %v302_v14 = vand.u32 8388607, %v295_v11  ;;  %vm296_vm11 = vcmp.le.f32.partialorder %v295_v11, 0.7853982 }
  0xe0   : > { %v511_v9 = vadd.s32 4294967169, %v299_v8  ;;  %v303_v33 = vor.u32 8388608, %v302_v14 }
  0xe2   : > { %v305_v10 = vadd.s32 1, %v511_v9  ;;  %v343_v47 = vshll.u32 %v303_v33, 8 }
  0xe4   : > { %vm306_vm3 = vcmp.gt.s32.totalorder %v305_v10, 0 }
  0xe5   : > { %v307_v12 = vsel %vm306_vm3, %v305_v10, 0 }
  0xe6   : > { %v309_v13 = vand.u32 31, %v307_v12  ;;  %v308_v16 = vshrl.u32 %v307_v12, 5 }
  0xe8   : > { %v310_v15 = vsub.s32 32, %v309_v13  ;;  %v312_v18 = vshll.u32 %v677_v17, %v309_v13  ;;  %v315_v20 = vshll.u32 %v678_v19, %v309_v13  ;;  %v318_v24 = vshll.u32 %v679_v22, %v309_v13 }
  0xe9   : > { %v321_v27 = vshll.u32 %v680_v25, %v309_v13  ;;  %v324_v30 = vshll.u32 %v681_v28, %v309_v13  ;;  %vm327_vm4 = vcmp.lt.s32.totalorder %v308_v16, 1  ;;  %vm330_vm5 = vcmp.lt.s32.totalorder %v308_v16, 4 }
  0xea   : > { %v313_v21 = vshrl.u32 %v678_v19, %v310_v15  ;;  %v316_v23 = vshrl.u32 %v679_v22, %v310_v15  ;;  %v319_v26 = vshrl.u32 %v680_v25, %v310_v15  ;;  %v322_v29 = vshrl.u32 %v681_v28, %v310_v15 }
  0xeb   : > { %v325_v32 = vshrl.u32 %v682_v31, %v310_v15  ;;  %v311_v42 = vshrl.u32 %v677_v17, %v310_v15  ;;  %vm329_vm6 = vcmp.lt.s32.totalorder %v308_v16, 3  ;;  %vm328_vm7 = vcmp.lt.s32.totalorder %v308_v16, 2 }
  0xec   : > { %v314_v34 = vor.u32 %v313_v21, %v312_v18  ;;  %v317_v35 = vor.u32 %v316_v23, %v315_v20  ;;  %v320_v36 = vor.u32 %v319_v26, %v318_v24  ;;  %v323_v37 = vor.u32 %v322_v29, %v321_v27 }
  0xed   : > { %v326_v38 = vor.u32 %v325_v32, %v324_v30 }
  0xee   : > { %v332_v39 = vsel %vm330_vm5, %v320_v36, 2102212464  ;;  %v335_v40 = vsel %vm327_vm4, %v314_v34, %v317_v35  ;;  %v339_v41 = vsel %vm327_vm4, %v317_v35, %v320_v36  ;;  %v336_v43 = vsel %vm330_vm5, %v323_v37, 920167782 }
  0xef   : > { %v340_v44 = vsel %vm330_vm5, %v326_v38, 1326507024  ;;  %v337_v45 = vsel %vm329_vm6, %v320_v36, %v336_v43  ;;  %v331_v48 = vsel %vm327_vm4, %v311_v42, %v314_v34  ;;  %v333_v49 = vsel %vm329_vm6, %v317_v35, %v332_v39 }
  0xf0   : > { %v341_v46 = vsel %vm329_vm6, %v323_v37, %v340_v44  ;;  %v338_v50 = vsel %vm328_vm7, %v335_v40, %v337_v45  ;;  %v334_v56 = vsel %vm328_vm7, %v331_v48, %v333_v49 }
  0xf1   : > { %v342_v51 = vsel %vm328_vm7, %v339_v41, %v341_v46  ;;  %v779_v54 = vmul.u32.u64.low %v343_v47, %v338_v50  ;;  %v780_v55 = vmul.u32.u64.high %v343_v47, %v338_v50, %v779_v54  ;;  %v350_v58 = vmul.u32 %v343_v47, %v334_v56 }
  0xf2   : > { %v776_v52 = vmul.u32.u64.low %v343_v47, %v342_v51  ;;  %v777_v53 = vmul.u32.u64.high %v343_v47, %v342_v51, %v776_v52 }
  0xf3   : > { %v353_v57 = vadd.s32 1, %v780_v55 }
  0xf4   : > { %vm352_vm8 = vc.u32 %v777_v53, %v779_v54  ;;  %v351_v7 = vadd.s32 %v779_v54, %v777_v53 }
  0xf5   : > { %v354_v59 = vsel %vm352_vm8, %v353_v57, %v780_v55 }
  0xf6   : > { %v355_v60 = vadd.s32 %v354_v59, %v350_v58 }
  0xf8   : > { %v356_v61 = vadd.s32 536870912, %v355_v60 }
  0xfa   : > { %v357_v62 = vshrl.u32 %v356_v61, 30 }
  0xfc   : > { %v358_v63 = vshll.u32 %v357_v62, 30  ;;  %v381_v23 = vsub.s32 4, %v357_v62 }
  0xfe   : > { %v359_v0 = vsub.s32 %v355_v60, %v358_v63  ;;  %v382_v24 = vsel %vm297_vm10, %v381_v23, %v357_v62 }
  0xff   : > { %v384_v25 = vsel %vm296_vm11, 0, %v382_v24 }
 0x100   : > { %v361_v1 = vsub.s32 0, %v359_v0  ;;  %v388_v26 = vand.u32 3, %v384_v25 }
 0x102   : > { %v512_v2 = vmin.u32 %v361_v1, %v359_v0  ;;  %vm393_vm12 = vcmp.eq.s32.totalorder %v388_v26, 2  ;;  %vm390_vm13 = vcmp.eq.s32.totalorder %v388_v26, 0  ;;  %vm389_vm14 = vcmp.lt.s32.totalorder %v388_v26, 2 }
 0x104   : > { %v363_v3 = vclz %v512_v2 }
 0x106   : > { %v513_v4 = vadd.s32 4294967294, %v363_v3 }
 0x108   : > { %vm514_vm9 = vcmp.lt.s32.totalorder %v513_v4, 0 }
 0x109   : > { %v366_v6 = vsel %vm514_vm9, 0, %v513_v4 }
 0x10a   : > { %v367_v8 = vsub.s32 32, %v366_v6  ;;  %v371_v9 = vsub.s32 4294967266, %v366_v6  ;;  %v368_v10 = vshll.u32 %v359_v0, %v366_v6 }
 0x10c   : > { %v369_v12 = vshrl.u32 %v351_v7, %v367_v8  ;;  %v372_v13 = vadd.s32 127, %v371_v9 }
 0x10e   : > { %v370_v14 = vor.u32 %v369_v12, %v368_v10  ;;  %v373_v15 = vshll.u32 %v372_v13, 23 }
 0x110   : > { %v374_v16 = vor.u32 4788187, %v373_v15  ;;  %v377_v18 = vcvt.s32.f32 %v370_v14 }
 0x112   : > { %v375_v17 = vand.u32 2147483647, %v374_v16 }
 0x114   : > { %v378_v19 = vmul.f32 %v377_v18, %v375_v17 }
 0x116   : > { %v379_v20 = vxor.u32 2147483648, %v378_v19 }
 0x118   : > { %v380_v21 = vsel %vm297_vm10, %v379_v20, %v378_v19 }
 0x119   : > { %v383_v22 = vsel %vm296_vm11, %v770_v5, %v380_v21 }
 0x11a   : > { %593 = vcosq.f32 %v383_v22 }
 0x11b   : > { %595 = vsinq.f32 %v383_v22 }
 0x127   : > { %v594_v27 = vpop.eup %593 }
 0x128   : > { %v596_v28 = vpop.eup %595  ;;  %v394_v29 = vxor.u32 2147483648, %v594_v27 }
 0x129   : > { %v391_v30 = vxor.u32 2147483648, %v596_v28 }
 0x12a   : > { %v395_v11 = vsel %vm393_vm12, %v394_v29, %v596_v28 }
 0x12b   : > { %v392_v31 = vsel %vm390_vm13, %v594_v27, %v391_v30 }
 0x12c   : > { %v396_v32 = vsel %vm389_vm14, %v392_v31, %v395_v11 }
 0x12d   : > { %v397_v33 = vsel %vm387_vm15, nan, %v396_v32 }
 0x12e   : > { %398 = vst [vmem:[%s196_s11] sm:$0xff] %v397_v33 }
 0x12f   : > { %610 = shalt.err (!%p607_p5)
}
 0x130   : > { %s611_s30 = scalar_lea.hbm %s796_s23, 128  ;;  %s615_s6 = scalar_lea.hbm %s839_s3, 256 }
 0x131   : > { %p612_p6 = scmp.ne.s32.totalorder %s796_s23, %s611_s30  ;;  %p616_p10 = scmp.lt.s32.totalorder %s796_s23, %s839_s3 }
 0x132   : > { %p617_p11 = scmp.lt.s32.totalorder %s615_s6, %s611_s30 }
 0x133   : > { %p613_p7 = pnand %p612_p6, %p744_p4 }
 0x134   : > { %p618_p12 = por %p617_p11, %p616_p10 }
 0x135   : > { %p614_p9 = pneg %p613_p7 }
 0x137   : > { %p619_p13 = pnand %p618_p12, %p614_p9 }
 0x139   : > { %622 = shalt.err (!%p619_p13)
}
 0x13a   : > { %530 = dma.vmem_to_hbm [thread:$0]  (%p744_p4), %s415_s18, 128, %s796_s23, %s400_s26  }
 0x13b PF: > { %p536_p0 = scmp.ge.s32.totalorder %s673_s17, 2  ;;  %s426_s9 = sand.u32 1, %s653_s12  }
 0x13c   : > { %s427_s10 = scalar_lea.sflag [#allocation3], %s426_s9 }
 0x13d   : > { %p533_p1 = pnand %p536_p0, %p751_p8 }
 0x13f   : > { %p534_p2 = pneg %p533_p1 }
 0x141   : > { %648 = dma.done.wait (%p534_p2), %s427_s10, 128  }
 0x142   : > { %650 = vsyncadd (%p534_p2), %s427_s10, 4294967168  ;;  %s16_s17 = sadd.s32 1, %s673_s17   ;;  %s842_s12 = smov %s657_s13 }
 0x143   : > { %p13_p3 = scmp.ge.s32.totalorder %s16_s17, 4   ;;  %s843_s13 = smov %s661_s14 }
 0x144   : > { %s844_s14 = smov %s757_s25  ;;  %s845_s15 = smov %s669_s16 }
 0x145   : > { %s846_s16 = smov %s848_s20  ;;  %15 = sbr.rel (!%p13_p3) target bundleno = 4 (0x4), region = 70 }
 0x14a   :  { %432 = vsyncpa [#allocation3], 1 }
 0x14b   :  { %434 = vsyncpa [#allocation3 + $0x1], 1 }

// kernel: tpu_custom_call.1
= control target key start
LH: loop header
LB: loop body
LE: loop exit
PB: predicated region body
PF: predicated region fallthrough
CT: control target
= control target key end

     0   :  { %8 = vsyncpa [#allocation3], 0  ;;  %s836_s0 = inlined_call_operand.vmem [shape: f32[16,4], index: 0, kind: input, shape index: {}]   ;;  %s837_s1 = inlined_call_operand.vmem [shape: f32[1,4,128], index: 1, kind: input, shape index: {}]   ;;  %s838_s2 = inlined_call_operand.vmem [shape: f32[1,128], index: 2, kind: input, shape index: {}]   ;;  %s839_s3 = inlined_call_operand.hbm [shape: f32[16,128], index: 3, kind: output, shape index: {}]  }
   0x1   :  { %10 = vsyncpa [#allocation3 + $0x1], 0  ;;  %s704_s12 = smov 0   ;;  %s706_s13 = smov 0  }
   0x2   :  { %s708_s14 = smov 0   ;;  %s710_s15 = smov 0  }
   0x3   :  { %s712_s16 = smov 0   ;;  %s714_s17 = smov 0  }
   0x4 LB: > { %s500_s18 = sadd.s32 4294967295, %s673_s17   ;;  %s501_s19 = sadd.s32 4294967294, %s673_s17   ;;  %s673_s17 = sphi %s714_s17, %s16_s17   ;;  %s669_s16 = sphi %s712_s16, %s846_s16   ;;  %s665_s15 = sphi %s710_s15, %s845_s15   ;;  %s661_s14 = sphi %s708_s14, %s844_s14   ;;  %s657_s13 = sphi %s706_s13, %s843_s13   ;;  %s653_s12 = sphi %s704_s12, %s842_s12  }
   0x5   : > { %s28_s20 = sadd.s32 1, %s669_s16  ;;  %s112_s21 = sadd.s32 1, %s661_s14 }
   0x6   : > { %p30_p0 = scmp.ge.s32.totalorder %s28_s20, 2  ;;  %p122_p1 = scmp.ne.s32.totalorder %s661_s14, %s657_s13 }
   0x7   : > { %p123_p2 = scmp.eq.s32.totalorder %s500_s18, 1  ;;  %p128_p3 = scmp.ne.s32.totalorder %s657_s13, %s653_s12 }
   0x8   : > { %s848_s20 = smov (%p30_p0, %s28_s20), 0  ;;  %p129_p5 = scmp.eq.s32.totalorder %s501_s19, 1 }
   0x9   : > { %p744_p4 = por %p123_p2, %p122_p1  ;;  %s107_s23 = ssub.s32 %s669_s16, %s848_s20 }
   0xa   : > { %p505_p6 = scmp.ge.s32.totalorder %s673_s17, 1  ;;  %p110_p7 = scmp.eq.s32.totalorder %s107_s23, 0 }
   0xb   : > { %p751_p8 = por %p129_p5, %p128_p3  ;;  %p167_p9 = scmp.lt.s32.totalorder %s673_s17, 3 }
   0xc   : > { %s757_s25 = scalar_select %p110_p7, %s661_s14, %s112_s21  }
   0xd   : > { %p168_p10 = pnand %p505_p6, %p167_p9 }
   0xe   : > { %p197_p11 = scmp.lt.s32.totalorder (!%p168_p10), %s665_s15, 1  ;;  %s194_s8 = sand.u32 (!%p168_p10), 1, %s657_s13  }
   0xf   : > { %171 = sbr.rel (%p168_p10) target bundleno = 315 (0x13b), region = 32  ;;  %s506_s9 = sshll.u32 (!%p168_p10), %s194_s8, 3 }
  0x10   : > { %s516_s10 = sshll.u32 (!%p168_p10), %s665_s15, 7  ;;  %s196_s11 = scalar_lea.vmem (!%p168_p10), [#allocation2], %s506_s9 }
  0x11   : > { %s414_s18 = sshll.u32 (!%p168_p10), %s196_s11, 4  ;;  %s796_s23 = scalar_lea.hbm (!%p168_p10), %s839_s3, %s516_s10  ;;  %s415_s18 = int_to_ptr.vmem [resolvable:$true] %s414_s18 }
  0x12   : > { %s400_s26 = scalar_lea.sflag (!%p168_p10), [#allocation3], %s194_s8  ;;  %s683_s27 = smov (!%p168_p10), [#allocation2]  }
  0x14   : > { %v209_v0 = vld [vmem:[%s837_s1] sm:$0xf]  ;;  %vm221_vm0 = vcmask 1043456   ;;  %v675_v1 = vmov 0.0   ;;  %vm676_vm1 = vmmov 0   ;;  %s198_s28 = scalar_select %p197_p11, %s665_s15, 1 }
  0x15   : > { %521 = vmatprep.subr.mxu0 %v675_v1  ;;  %523 = vmatprep.mubr.msk.f32.mxu0 %vm676_vm1, %v675_v1  ;;  %vm217_vm2 = vcmask 31744   ;;  %v508_v3 = vld [vmem:[%s838_s2] ss:$0 sm:$0xff]  ;;  %v677_v17 = vmov 683565275   ;;  %s597_s15 = scalar_lea.vmem %s415_s18, 128 }
  0x16   : > { %522 = vmatpush3.msk.msra.mxu0 %vm221_vm0, %v209_v0  ;;  %s507_s29 = sshll.u32 %s198_s28, 3  ;;  %v678_v19 = vmov 2475754826   ;;  %v679_v22 = vmov 2131351028   ;;  %p598_p12 = scmp.ne.s32.totalorder %s415_s18, %s597_s15 }
  0x17   : > { %s203_s5 = scalar_lea.vmem %s836_s0, %s507_s29  ;;  %v680_v25 = vmov 2102212464   ;;  %v681_v28 = vmov 920167782   ;;  %v682_v31 = vmov 1326507024  }
  0x18   : > { %v208_v2 = vld [vmem:[%s203_s5] sm:$0xff]  ;;  %p599_p13 = pnand %p598_p12, %p744_p4  ;;  %s601_s28 = sshll.u32 %s683_s27, 4  ;;  %s602_s28 = int_to_ptr.vmem [resolvable:$false] %s601_s28 }
  0x19   : > { %524 = vmatmul.mubr.msk.f32.vlgmr.msra.gmra.mxu0 %vm217_vm2, %v208_v2  ;;  %s603_s29 = scalar_lea.vmem %s602_s28, 256  ;;  %p604_p1 = scmp.lt.s32.totalorder %s415_s18, %s602_s28 }
  0x1a   : > { %p600_p0 = pneg %p599_p13  ;;  %p605_p2 = scmp.lt.s32.totalorder %s603_s29, %s597_s15 }
  0x1c   : > { %p606_p3 = por %p605_p2, %p604_p1 }
  0x1e   : > { %p607_p5 = pnand %p606_p3, %p600_p0 }
  0xd9   : > { %v291_v4 = vpop.f32.mrf.mxu0 }
  0xda   : > { %v770_v5 = vadd.f32 %v508_v3, %v291_v4 }
  0xdb   : > { %v525_v6 = vpop.f32.mrf.mxu0 }
  0xdc   : > { %v298_v7 = vand.u32 2139095040, %v770_v5  ;;  %v295_v11 = vand.u32 2147483647, %v770_v5  ;;  %vm297_vm10 = vcmp.lt.s32.totalorder %v770_v5, 0  ;;  %vm387_vm15 = vweird.f32 %v770_v5 }
  0xde   : > { %v299_v8 = vshrl.u32 %v298_v7, 23  ;;  %v302_v14 = vand.u32 8388607, %v295_v11  ;;  %vm296_vm11 = vcmp.le.f32.partialorder %v295_v11, 0.7853982 }
  0xe0   : > { %v511_v9 = vadd.s32 4294967169, %v299_v8  ;;  %v303_v33 = vor.u32 8388608, %v302_v14 }
  0xe2   : > { %v305_v10 = vadd.s32 1, %v511_v9  ;;  %v343_v47 = vshll.u32 %v303_v33, 8 }
  0xe4   : > { %vm306_vm3 = vcmp.gt.s32.totalorder %v305_v10, 0 }
  0xe5   : > { %v307_v12 = vsel %vm306_vm3, %v305_v10, 0 }
  0xe6   : > { %v309_v13 = vand.u32 31, %v307_v12  ;;  %v308_v16 = vshrl.u32 %v307_v12, 5 }
  0xe8   : > { %v310_v15 = vsub.s32 32, %v309_v13  ;;  %v312_v18 = vshll.u32 %v677_v17, %v309_v13  ;;  %v315_v20 = vshll.u32 %v678_v19, %v309_v13  ;;  %v318_v24 = vshll.u32 %v679_v22, %v309_v13 }
  0xe9   : > { %v321_v27 = vshll.u32 %v680_v25, %v309_v13  ;;  %v324_v30 = vshll.u32 %v681_v28, %v309_v13  ;;  %vm327_vm4 = vcmp.lt.s32.totalorder %v308_v16, 1  ;;  %vm330_vm5 = vcmp.lt.s32.totalorder %v308_v16, 4 }
  0xea   : > { %v313_v21 = vshrl.u32 %v678_v19, %v310_v15  ;;  %v316_v23 = vshrl.u32 %v679_v22, %v310_v15  ;;  %v319_v26 = vshrl.u32 %v680_v25, %v310_v15  ;;  %v322_v29 = vshrl.u32 %v681_v28, %v310_v15 }
  0xeb   : > { %v325_v32 = vshrl.u32 %v682_v31, %v310_v15  ;;  %v311_v42 = vshrl.u32 %v677_v17, %v310_v15  ;;  %vm329_vm6 = vcmp.lt.s32.totalorder %v308_v16, 3  ;;  %vm328_vm7 = vcmp.lt.s32.totalorder %v308_v16, 2 }
  0xec   : > { %v314_v34 = vor.u32 %v313_v21, %v312_v18  ;;  %v317_v35 = vor.u32 %v316_v23, %v315_v20  ;;  %v320_v36 = vor.u32 %v319_v26, %v318_v24  ;;  %v323_v37 = vor.u32 %v322_v29, %v321_v27 }
  0xed   : > { %v326_v38 = vor.u32 %v325_v32, %v324_v30 }
  0xee   : > { %v332_v39 = vsel %vm330_vm5, %v320_v36, 2102212464  ;;  %v335_v40 = vsel %vm327_vm4, %v314_v34, %v317_v35  ;;  %v339_v41 = vsel %vm327_vm4, %v317_v35, %v320_v36  ;;  %v336_v43 = vsel %vm330_vm5, %v323_v37, 920167782 }
  0xef   : > { %v340_v44 = vsel %vm330_vm5, %v326_v38, 1326507024  ;;  %v337_v45 = vsel %vm329_vm6, %v320_v36, %v336_v43  ;;  %v331_v48 = vsel %vm327_vm4, %v311_v42, %v314_v34  ;;  %v333_v49 = vsel %vm329_vm6, %v317_v35, %v332_v39 }
  0xf0   : > { %v341_v46 = vsel %vm329_vm6, %v323_v37, %v340_v44  ;;  %v338_v50 = vsel %vm328_vm7, %v335_v40, %v337_v45  ;;  %v334_v56 = vsel %vm328_vm7, %v331_v48, %v333_v49 }
  0xf1   : > { %v342_v51 = vsel %vm328_vm7, %v339_v41, %v341_v46  ;;  %v779_v54 = vmul.u32.u64.low %v343_v47, %v338_v50  ;;  %v780_v55 = vmul.u32.u64.high %v343_v47, %v338_v50, %v779_v54  ;;  %v350_v58 = vmul.u32 %v343_v47, %v334_v56 }
  0xf2   : > { %v776_v52 = vmul.u32.u64.low %v343_v47, %v342_v51  ;;  %v777_v53 = vmul.u32.u64.high %v343_v47, %v342_v51, %v776_v52 }
  0xf3   : > { %v353_v57 = vadd.s32 1, %v780_v55 }
  0xf4   : > { %vm352_vm8 = vc.u32 %v777_v53, %v779_v54  ;;  %v351_v7 = vadd.s32 %v779_v54, %v777_v53 }
  0xf5   : > { %v354_v59 = vsel %vm352_vm8, %v353_v57, %v780_v55 }
  0xf6   : > { %v355_v60 = vadd.s32 %v354_v59, %v350_v58 }
  0xf8   : > { %v356_v61 = vadd.s32 536870912, %v355_v60 }
  0xfa   : > { %v357_v62 = vshrl.u32 %v356_v61, 30 }
  0xfc   : > { %v358_v63 = vshll.u32 %v357_v62, 30  ;;  %v381_v23 = vsub.s32 4, %v357_v62 }
  0xfe   : > { %v359_v0 = vsub.s32 %v355_v60, %v358_v63  ;;  %v382_v24 = vsel %vm297_vm10, %v381_v23, %v357_v62 }
  0xff   : > { %v384_v25 = vsel %vm296_vm11, 0, %v382_v24 }
 0x100   : > { %v361_v1 = vsub.s32 0, %v359_v0  ;;  %v388_v26 = vand.u32 3, %v384_v25 }
 0x102   : > { %v512_v2 = vmin.u32 %v361_v1, %v359_v0  ;;  %vm393_vm12 = vcmp.eq.s32.totalorder %v388_v26, 2  ;;  %vm390_vm13 = vcmp.eq.s32.totalorder %v388_v26, 0  ;;  %vm389_vm14 = vcmp.lt.s32.totalorder %v388_v26, 2 }
 0x104   : > { %v363_v3 = vclz %v512_v2 }
 0x106   : > { %v513_v4 = vadd.s32 4294967294, %v363_v3 }
 0x108   : > { %vm514_vm9 = vcmp.lt.s32.totalorder %v513_v4, 0 }
 0x109   : > { %v366_v6 = vsel %vm514_vm9, 0, %v513_v4 }
 0x10a   : > { %v367_v8 = vsub.s32 32, %v366_v6  ;;  %v371_v9 = vsub.s32 4294967266, %v366_v6  ;;  %v368_v10 = vshll.u32 %v359_v0, %v366_v6 }
 0x10c   : > { %v369_v12 = vshrl.u32 %v351_v7, %v367_v8  ;;  %v372_v13 = vadd.s32 127, %v371_v9 }
 0x10e   : > { %v370_v14 = vor.u32 %v369_v12, %v368_v10  ;;  %v373_v15 = vshll.u32 %v372_v13, 23 }
 0x110   : > { %v374_v16 = vor.u32 4788187, %v373_v15  ;;  %v377_v18 = vcvt.s32.f32 %v370_v14 }
 0x112   : > { %v375_v17 = vand.u32 2147483647, %v374_v16 }
 0x114   : > { %v378_v19 = vmul.f32 %v377_v18, %v375_v17 }
 0x116   : > { %v379_v20 = vxor.u32 2147483648, %v378_v19 }
 0x118   : > { %v380_v21 = vsel %vm297_vm10, %v379_v20, %v378_v19 }
 0x119   : > { %v383_v22 = vsel %vm296_vm11, %v770_v5, %v380_v21 }
 0x11a   : > { %593 = vcosq.f32 %v383_v22 }
 0x11b   : > { %595 = vsinq.f32 %v383_v22 }
 0x127   : > { %v594_v27 = vpop.eup %593 }
 0x128   : > { %v596_v28 = vpop.eup %595  ;;  %v394_v29 = vxor.u32 2147483648, %v594_v27 }
 0x129   : > { %v391_v30 = vxor.u32 2147483648, %v596_v28 }
 0x12a   : > { %v395_v11 = vsel %vm393_vm12, %v394_v29, %v596_v28 }
 0x12b   : > { %v392_v31 = vsel %vm390_vm13, %v594_v27, %v391_v30 }
 0x12c   : > { %v396_v32 = vsel %vm389_vm14, %v392_v31, %v395_v11 }
 0x12d   : > { %v397_v33 = vsel %vm387_vm15, nan, %v396_v32 }
 0x12e   : > { %398 = vst [vmem:[%s196_s11] sm:$0xff] %v397_v33 }
 0x12f   : > { %610 = shalt.err (!%p607_p5)
}
 0x130   : > { %s611_s30 = scalar_lea.hbm %s796_s23, 128  ;;  %s615_s6 = scalar_lea.hbm %s839_s3, 256 }
 0x131   : > { %p612_p6 = scmp.ne.s32.totalorder %s796_s23, %s611_s30  ;;  %p616_p10 = scmp.lt.s32.totalorder %s796_s23, %s839_s3 }
 0x132   : > { %p617_p11 = scmp.lt.s32.totalorder %s615_s6, %s611_s30 }
 0x133   : > { %p613_p7 = pnand %p612_p6, %p744_p4 }
 0x134   : > { %p618_p12 = por %p617_p11, %p616_p10 }
 0x135   : > { %p614_p9 = pneg %p613_p7 }
 0x137   : > { %p619_p13 = pnand %p618_p12, %p614_p9 }
 0x139   : > { %622 = shalt.err (!%p619_p13)
}
 0x13a   : > { %530 = dma.vmem_to_hbm [thread:$0]  (%p744_p4), %s415_s18, 128, %s796_s23, %s400_s26  }
 0x13b PF: > { %p536_p0 = scmp.ge.s32.totalorder %s673_s17, 2  ;;  %s426_s9 = sand.u32 1, %s653_s12  }
 0x13c   : > { %s427_s10 = scalar_lea.sflag [#allocation3], %s426_s9 }
 0x13d   : > { %p533_p1 = pnand %p536_p0, %p751_p8 }
 0x13f   : > { %p534_p2 = pneg %p533_p1 }
 0x141   : > { %648 = dma.done.wait (%p534_p2), %s427_s10, 128  }
 0x142   : > { %650 = vsyncadd (%p534_p2), %s427_s10, 4294967168  ;;  %s16_s17 = sadd.s32 1, %s673_s17   ;;  %s842_s12 = smov %s657_s13 }
 0x143   : > { %p13_p3 = scmp.ge.s32.totalorder %s16_s17, 4   ;;  %s843_s13 = smov %s661_s14 }
 0x144   : > { %s844_s14 = smov %s757_s25  ;;  %s845_s15 = smov %s669_s16 }
 0x145   : > { %s846_s16 = smov %s848_s20  ;;  %15 = sbr.rel (!%p13_p3) target bundleno = 4 (0x4), region = 70 }
 0x14a   :  { %432 = vsyncpa [#allocation3], 1 }
 0x14b   :  { %434 = vsyncpa [#allocation3 + $0x1], 1 }

</bundles_post_ra>
